<compile_context>
chip_gen: v7x
topology: tpu7x:2x2x1
jax: 0.10.0
libtpu: 0.0.40
codegen_flags: <defaults>
</compile_context>

<pallas_src>
import jax
import jax.numpy as jnp
from jax.experimental import pallas as pl
from jax.experimental.pallas import tpu as pltpu


def _anatomy_kernel(q_ref, rf_ref, wt_ref, b_ref, prior_ref, enh_ref, klx_ref):
    # q_ref:     (Bt, N, D)  decoder query vectors for this batch block
    # rf_ref:    (Bt, K, D)  anatomical region features
    # wt_ref:    (D, D)      attention_projection.weight, pre-transposed (in, out)
    # b_ref:     (1, D)      attention_projection.bias
    # prior_ref: (1, K)      normalized prior distribution
    # enh_ref:   (Bt, N, D)  OUT enhanced queries
    # klx_ref:   (Bt, 1, 1)  OUT per-batch KL cross term sum_k p[k]*log(mean_att[b,k])
    bt, n, d = q_ref.shape

    q = q_ref[...].astype(jnp.float32)      # (Bt, N, D)
    rf = rf_ref[...].astype(jnp.float32)    # (Bt, K, D)

    # Linear projection: flatten (Bt*N, D) so the MXU sees a sublane-filled LHS.
    proj = jnp.dot(q.reshape(bt * n, d), wt_ref[...],
                   preferred_element_type=jnp.float32) + b_ref[...]
    proj = proj.reshape(bt, n, d)

    # Attention logits: contract over D without an explicit rf transpose.
    logits = jnp.einsum('bnd,bkd->bnk', proj, rf,
                        preferred_element_type=jnp.float32)       # (Bt, N, K)

    # Softmax over regions (last axis).
    m = jnp.max(logits, axis=-1, keepdims=True)
    e = jnp.exp(logits - m)
    denom = jnp.sum(e, axis=-1, keepdims=True)
    scores = e * pl.reciprocal(denom)                             # (Bt, N, K)

    # Fused KL cross term: mean attention over queries, dotted with the prior.
    mean_att = jnp.mean(scores, axis=1)                           # (Bt, K)
    mean_att = jnp.maximum(mean_att, jnp.finfo(jnp.float32).tiny)  # guard log(0)
    cross = jnp.sum(prior_ref[...] * jnp.log(mean_att),
                    axis=-1, keepdims=True)                       # (Bt, 1)
    klx_ref[...] = cross.reshape(bt, 1, 1)

    # Region context and residual: enhanced = q + scores @ rf.
    ctx = jnp.einsum('bnk,bkd->bnd', scores, rf,
                     preferred_element_type=jnp.float32)
    enh_ref[...] = (q + ctx).astype(enh_ref.dtype)


def _pick_block_b(batch):
    """Batch elements per grid step.

    Batching several batch elements per step amortizes the ~0.35us per-step
    pipeline overhead (the workload is vreg-scale).  Once the batch is large
    enough, keep >=2 "parallel" grid steps so both v7x TensorCores get work.
    """
    if batch <= 8:
        return batch                       # tiny: fold everything into one step
    for bb in (32, 16, 8, 4, 2, 1):
        if batch % bb == 0 and batch // bb >= 2:
            return bb
    return batch


def anatomical_constraint_forward(query_vectors, region_features, weight, bias,
                                  prior, region_embeddings=None):
    """Returns (enhanced_queries [B, N, D], kl_loss scalar)."""
    B, N, D = query_vectors.shape
    if region_features is None:
        # region_features = region_embeddings broadcast over batch
        region_features = jnp.broadcast_to(
            region_embeddings[None, :, :], (B,) + region_embeddings.shape)
    K = region_features.shape[1]

    wt = weight.T.astype(jnp.float32)            # [out, in] -> [in, out]
    b2 = bias.reshape(1, D).astype(jnp.float32)

    # Normalized prior — matches the PyTorch forward's prior / prior.sum(-1).
    prior_f = prior.astype(jnp.float32)
    prior_n = prior_f / jnp.sum(prior_f)
    prior_2d = prior_n.reshape(1, K)

    bt = _pick_block_b(B)
    grid = (B // bt,)

    enhanced, kl_cross = pl.pallas_call(
        _anatomy_kernel,
        out_shape=(
            jax.ShapeDtypeStruct((B, N, D), query_vectors.dtype),
            jax.ShapeDtypeStruct((B, 1, 1), jnp.float32),
        ),
        grid_spec=pltpu.PrefetchScalarGridSpec(
            num_scalar_prefetch=0,
            grid=grid,
            in_specs=[
                pl.BlockSpec((bt, N, D), lambda b: (b, 0, 0)),   # queries
                pl.BlockSpec((bt, K, D), lambda b: (b, 0, 0)),   # region features
                pl.BlockSpec((D, D), lambda b: (0, 0)),          # weight^T (resident)
                pl.BlockSpec((1, D), lambda b: (0, 0)),          # bias (resident)
                pl.BlockSpec((1, K), lambda b: (0, 0)),          # prior (resident)
            ],
            out_specs=[
                pl.BlockSpec((bt, N, D), lambda b: (b, 0, 0)),   # enhanced queries
                pl.BlockSpec((bt, 1, 1), lambda b: (b, 0, 0)),   # KL partials
            ],
        ),
        compiler_params=pltpu.CompilerParams(
            dimension_semantics=("parallel",)),
    )(query_vectors, region_features, wt, b2, prior_2d)

    # kl = sum_{b,k} p[k]*(log p[k] - log q[b,k]) / B
    #    = sum_k p*log p  -  (1/B) * sum_b cross[b]
    const_term = jnp.sum(prior_n * jnp.log(prior_n))
    kl_loss = const_term - jnp.sum(kl_cross) / B
    return enhanced, kl_loss


def _reference_forward(query_vectors, region_features, weight, bias, prior):
    """Pure-JAX reference mirroring the PyTorch forward."""
    proj = jnp.einsum('bnd,ed->bne', query_vectors, weight) + bias
    logits = jnp.einsum('bnd,bkd->bnk', proj, region_features)
    scores = jax.nn.softmax(logits, axis=-1)
    mean_attention = scores.mean(axis=1)
    B = query_vectors.shape[0]
    prior_n = prior / jnp.sum(prior)
    prior_b = jnp.broadcast_to(prior_n[None, :], mean_attention.shape)
    kl = jnp.sum(prior_b * (jnp.log(prior_b) - jnp.log(mean_attention))) / B
    ctx = jnp.einsum('bnk,bkd->bnd', scores, region_features)
    return query_vectors + ctx, kl


if __name__ == "__main__":
    # Synthetic config: 4 anatomical regions, decoder dim 32.
    B, N, K, D = 2, 8, 4, 32
    region_names = ['mandibular_canal', 'alveolar_ridge',
                    'mental_foramen', 'apical_lesion_region']
    prior_distributions = {'mandibular_canal': 0.3, 'alveolar_ridge': 0.3,
                           'mental_foramen': 0.2, 'apical_lesion_region': 0.2}
    prior = jnp.array([prior_distributions.get(r, 0.1) for r in region_names],
                      dtype=jnp.float32)

    key = jax.random.PRNGKey(0)
    k1, k2, k3, k4, k5, k6 = jax.random.split(key, 6)

    # Deterministic parameter init (shapes per module __init__).
    region_embeddings = jax.random.normal(k1, (K, D), dtype=jnp.float32)
    weight = jax.random.normal(k2, (D, D), dtype=jnp.float32) * 0.1   # Linear weight [out, in]
    bias = jax.random.normal(k3, (D,), dtype=jnp.float32) * 0.1       # Linear bias [out]

    # Example inputs.
    query_vectors = jax.random.normal(k4, (B, N, D), dtype=jnp.float32)
    region_features = jax.random.normal(k5, (B, K, D), dtype=jnp.float32)

    enhanced, kl_loss = anatomical_constraint_forward(
        query_vectors, region_features, weight, bias, prior,
        region_embeddings=region_embeddings)
    jax.block_until_ready((enhanced, kl_loss))

    # Validate against a pure-JAX reference.
    ref_enh, ref_kl = _reference_forward(query_vectors, region_features,
                                         weight, bias, prior)
    assert jnp.allclose(enhanced, ref_enh, atol=1e-4, rtol=1e-4)
    assert jnp.allclose(kl_loss, ref_kl, atol=1e-5, rtol=1e-4)

    # Also exercise the region_features=None path (uses region_embeddings).
    enh2, kl2 = anatomical_constraint_forward(
        query_vectors, None, weight, bias, prior,
        region_embeddings=region_embeddings)
    rf_bcast = jnp.broadcast_to(region_embeddings[None, :, :], (B, K, D))
    ref_enh2, ref_kl2 = _reference_forward(query_vectors, rf_bcast,
                                           weight, bias, prior)
    jax.block_until_ready((enh2, kl2))
    assert jnp.allclose(enh2, ref_enh2, atol=1e-4, rtol=1e-4)
    assert jnp.allclose(kl2, ref_kl2, atol=1e-5, rtol=1e-4)

    print("KERNEL_OK")
</pallas_src>

<mosaic_0001>
module attributes {stable_mosaic.version = 11 : i64} {
  func.func @_anatomy_kernel(%arg0: i32, %arg1: memref<2x8x32xf32, #tpu.memory_space<vmem>>, %arg2: memref<2x4x32xf32, #tpu.memory_space<vmem>>, %arg3: memref<32x32xf32, #tpu.memory_space<vmem>>, %arg4: memref<1x32xf32, #tpu.memory_space<vmem>>, %arg5: memref<1x4xf32, #tpu.memory_space<vmem>>, %arg6: memref<2x8x32xf32, #tpu.memory_space<vmem>>, %arg7: memref<2x1x1xf32, #tpu.memory_space<vmem>>) attributes {dimension_semantics = [#tpu.dimension_semantics<parallel>], iteration_bounds = array<i64: 1>, scalar_prefetch = 0 : i64, scratch_operands = 0 : i64, tpu.core_type = #tpu.core_type<tc>, window_params = [{transform_indices = @transform_0, window_bounds = array<i64: 2, 8, 32>}, {transform_indices = @transform_1, window_bounds = array<i64: 2, 4, 32>}, {pipeline_mode = #tpu.pipeline_mode<synchronous>, transform_indices = @transform_2, window_bounds = array<i64: 32, 32>}, {pipeline_mode = #tpu.pipeline_mode<synchronous>, transform_indices = @transform_3, window_bounds = array<i64: 1, 32>}, {pipeline_mode = #tpu.pipeline_mode<synchronous>, transform_indices = @transform_4, window_bounds = array<i64: 1, 4>}, {transform_indices = @transform_5, window_bounds = array<i64: 2, 8, 32>}, {transform_indices = @transform_6, window_bounds = array<i64: 2, 1, 1>}]} {
    %c0 = arith.constant 0 : index
    %c0_0 = arith.constant 0 : index
    %c0_1 = arith.constant 0 : index
    %0 = vector.load %arg1[%c0, %c0_0, %c0_1] : memref<2x8x32xf32, #tpu.memory_space<vmem>>, vector<2x8x32xf32>
    %c0_2 = arith.constant 0 : index
    %c0_3 = arith.constant 0 : index
    %c0_4 = arith.constant 0 : index
    %1 = vector.load %arg2[%c0_2, %c0_3, %c0_4] : memref<2x4x32xf32, #tpu.memory_space<vmem>>, vector<2x4x32xf32>
    %2 = vector.shape_cast %0 : vector<2x8x32xf32> to vector<16x32xf32>
    %c0_5 = arith.constant 0 : index
    %c0_6 = arith.constant 0 : index
    %3 = vector.load %arg3[%c0_5, %c0_6] : memref<32x32xf32, #tpu.memory_space<vmem>>, vector<32x32xf32>
    %cst = arith.constant dense<0.000000e+00> : vector<16x32xf32>
    %4 = tpu.matmul %2, %3, %cst {dimension_numbers = #tpu.dot_dimension_numbers<[1], [0], [0], [1], [0, 0, 1, 1], [], []>} : vector<16x32xf32>, vector<32x32xf32>, vector<16x32xf32> -> vector<16x32xf32>
    %c0_7 = arith.constant 0 : index
    %c0_8 = arith.constant 0 : index
    %5 = vector.load %arg4[%c0_7, %c0_8] : memref<1x32xf32, #tpu.memory_space<vmem>>, vector<1x32xf32>
    %6 = vector.broadcast %5 : vector<1x32xf32> to vector<16x32xf32>
    %7 = arith.addf %4, %6 : vector<16x32xf32>
    %8 = vector.shape_cast %7 : vector<16x32xf32> to vector<2x8x32xf32>
    "tpu.trace_start"() <{level = 10 : i32, message = "bnd,bkd->bnk"}> : () -> ()
    %cst_9 = arith.constant dense<0.000000e+00> : vector<2x8x4xf32>
    %9 = tpu.matmul %8, %1, %cst_9 {dimension_numbers = #tpu.dot_dimension_numbers<[2], [2], [1], [1], [0, 0, 0, 1, 1, 1], [0], [0]>} : vector<2x8x32xf32>, vector<2x4x32xf32>, vector<2x8x4xf32> -> vector<2x8x4xf32>
    "tpu.trace_stop"() : () -> ()
    %cst_10 = arith.constant dense<0xFF800000> : vector<2x8xf32>
    %10 = vector.multi_reduction <maximumf>, %9, %cst_10 [2] : vector<2x8x4xf32> to vector<2x8xf32>
    %11 = vector.shape_cast %10 : vector<2x8xf32> to vector<2x8x1xf32>
    %12 = vector.broadcast %11 : vector<2x8x1xf32> to vector<2x8x4xf32>
    %13 = arith.subf %9, %12 : vector<2x8x4xf32>
    %14 = math.exp %13 : vector<2x8x4xf32>
    %cst_11 = arith.constant dense<0.000000e+00> : vector<2x8xf32>
    %15 = vector.multi_reduction <add>, %14, %cst_11 [2] : vector<2x8x4xf32> to vector<2x8xf32>
    %16 = vector.shape_cast %15 : vector<2x8xf32> to vector<2x8x1xf32>
    %17 = tpu.reciprocal %16 : vector<2x8x1xf32> -> vector<2x8x1xf32>
    %18 = vector.broadcast %17 : vector<2x8x1xf32> to vector<2x8x4xf32>
    %19 = arith.mulf %14, %18 : vector<2x8x4xf32>
    %cst_12 = arith.constant dense<0.000000e+00> : vector<2x4xf32>
    %20 = vector.multi_reduction <add>, %19, %cst_12 [1] : vector<2x8x4xf32> to vector<2x4xf32>
    %cst_13 = arith.constant 8.000000e+00 : f32
    %21 = vector.broadcast %cst_13 : f32 to vector<2x4xf32>
    %22 = arith.divf %20, %21 : vector<2x4xf32>
    %cst_14 = arith.constant 1.17549435E-38 : f32
    %23 = vector.broadcast %cst_14 : f32 to vector<2x4xf32>
    %24 = arith.maximumf %22, %23 : vector<2x4xf32>
    %c0_15 = arith.constant 0 : index
    %c0_16 = arith.constant 0 : index
    %25 = vector.load %arg5[%c0_15, %c0_16] : memref<1x4xf32, #tpu.memory_space<vmem>>, vector<1x4xf32>
    %26 = math.log %24 : vector<2x4xf32>
    %27 = vector.broadcast %25 : vector<1x4xf32> to vector<2x4xf32>
    %28 = arith.mulf %27, %26 : vector<2x4xf32>
    %cst_17 = arith.constant dense<0.000000e+00> : vector<2xf32>
    %29 = vector.multi_reduction <add>, %28, %cst_17 [1] : vector<2x4xf32> to vector<2xf32>
    %30 = vector.shape_cast %29 : vector<2xf32> to vector<2x1xf32>
    %31 = vector.shape_cast %30 : vector<2x1xf32> to vector<2x1x1xf32>
    %c0_18 = arith.constant 0 : index
    %c0_19 = arith.constant 0 : index
    %c0_20 = arith.constant 0 : index
    %32 = vector.load %arg7[%c0_18, %c0_19, %c0_20] : memref<2x1x1xf32, #tpu.memory_space<vmem>>, vector<2x1x1xf32>
    tpu.vector_store %arg7[%c0_18, %c0_19, %c0_20], %31 {strides = array<i32>} : memref<2x1x1xf32, #tpu.memory_space<vmem>>, vector<2x1x1xf32>,
    "tpu.trace_start"() <{level = 10 : i32, message = "bnk,bkd->bnd"}> : () -> ()
    %cst_21 = arith.constant dense<0.000000e+00> : vector<2x8x32xf32>
    %33 = tpu.matmul %19, %1, %cst_21 {dimension_numbers = #tpu.dot_dimension_numbers<[2], [1], [1], [2], [0, 0, 0, 1, 1, 2], [0], [0]>} : vector<2x8x4xf32>, vector<2x4x32xf32>, vector<2x8x32xf32> -> vector<2x8x32xf32>
    "tpu.trace_stop"() : () -> ()
    %34 = arith.addf %0, %33 : vector<2x8x32xf32>
    %c0_22 = arith.constant 0 : index
    %c0_23 = arith.constant 0 : index
    %c0_24 = arith.constant 0 : index
    %35 = vector.load %arg6[%c0_22, %c0_23, %c0_24] : memref<2x8x32xf32, #tpu.memory_space<vmem>>, vector<2x8x32xf32>
    tpu.vector_store %arg6[%c0_22, %c0_23, %c0_24], %34 {strides = array<i32>} : memref<2x8x32xf32, #tpu.memory_space<vmem>>, vector<2x8x32xf32>,
    return
  }
  func.func @transform_0(%arg0: i32) -> (i32, i32, i32) {
    %c0_i32 = arith.constant 0 : i32
    %c0_i32_0 = arith.constant 0 : i32
    %c0_i32_1 = arith.constant 0 : i32
    return %arg0, %c0_i32, %c0_i32_0 : i32, i32, i32
  }
  func.func @transform_1(%arg0: i32) -> (i32, i32, i32) {
    %c0_i32 = arith.constant 0 : i32
    %c0_i32_0 = arith.constant 0 : i32
    %c0_i32_1 = arith.constant 0 : i32
    return %arg0, %c0_i32, %c0_i32_0 : i32, i32, i32
  }
  func.func @transform_2(%arg0: i32) -> (i32, i32) {
    %c0_i32 = arith.constant 0 : i32
    %c0_i32_0 = arith.constant 0 : i32
    %c0_i32_1 = arith.constant 0 : i32
    return %c0_i32, %c0_i32_0 : i32, i32
  }
  func.func @transform_3(%arg0: i32) -> (i32, i32) {
    %c0_i32 = arith.constant 0 : i32
    %c0_i32_0 = arith.constant 0 : i32
    %c0_i32_1 = arith.constant 0 : i32
    return %c0_i32, %c0_i32_0 : i32, i32
  }
  func.func @transform_4(%arg0: i32) -> (i32, i32) {
    %c0_i32 = arith.constant 0 : i32
    %c0_i32_0 = arith.constant 0 : i32
    %c0_i32_1 = arith.constant 0 : i32
    return %c0_i32, %c0_i32_0 : i32, i32
  }
  func.func @transform_5(%arg0: i32) -> (i32, i32, i32) {
    %c0_i32 = arith.constant 0 : i32
    %c0_i32_0 = arith.constant 0 : i32
    %c0_i32_1 = arith.constant 0 : i32
    return %arg0, %c0_i32, %c0_i32_0 : i32, i32, i32
  }
  func.func @transform_6(%arg0: i32) -> (i32, i32, i32) {
    %c0_i32 = arith.constant 0 : i32
    %c0_i32_0 = arith.constant 0 : i32
    %c0_i32_1 = arith.constant 0 : i32
    return %arg0, %c0_i32, %c0_i32_0 : i32, i32, i32
  }
}

</mosaic_0001>

<bundles_post_ra>
// kernel: tpu_custom_call.1
= control target key start
LH: loop header
LB: loop body
LE: loop exit
PB: predicated region body
PF: predicated region fallthrough
CT: control target
= control target key end

     0   :  { %12 = vsyncpa [#allocation3], 0  ;;  %s886_s0 = inlined_call_operand.hbm [shape: f32[2,8,32], index: 0, kind: input, shape index: {}]   ;;  %s887_s1 = inlined_call_operand.hbm [shape: f32[2,4,32], index: 1, kind: input, shape index: {}]   ;;  %s888_s2 = inlined_call_operand.hbm [shape: f32[32,32], index: 2, kind: input, shape index: {}]   ;;  %s889_s3 = inlined_call_operand.vmem [shape: f32[1,32], index: 3, kind: input, shape index: {}]   ;;  %s890_s4 = inlined_call_operand.vmem [shape: f32[1,4], index: 4, kind: input, shape index: {}]   ;;  %s891_s5 = inlined_call_operand.hbm [shape: f32[2,8,32], index: 5, kind: output, shape index: {0}]   ;;  %s892_s6 = inlined_call_operand.vmem [shape: f32[2,1,1], index: 6, kind: output, shape index: {1}]  }
   0x1   :  { %13 = vsyncpa [#allocation6], 0 }
   0x2   :  { %14 = vsyncpa [#allocation4], 0  ;;  %s748_s21 = smov [#allocation5]   ;;  %s654_s25 = scalar_lea.hbm %s887_s1, 128 }
   0x3   :  { %s32_s22 = sshll.u32 %s748_s21, 4  ;;  %p655_p0 = scmp.ne.s32.totalorder %s887_s1, %s654_s25  ;;  %s33_s22 = int_to_ptr.vmem [resolvable:$true] %s32_s22 }
   0x4   :  { %p658_p1 = scmp.lt.u32.totalorder %s654_s25, %s887_s1 }
   0x6   :  { %p660_p2 = pnand %p658_p1, %p655_p0 }
   0x8   :  { %663 = shalt.err (!%p660_p2)
}
   0x9   :  { %s664_s30 = scalar_lea.vmem %s33_s22, 128  ;;  %p669_p4 = scmp.lt.s32.totalorder %s33_s22, %s33_s22 }
   0xa   :  { %p665_p3 = scmp.ne.s32.totalorder %s33_s22, %s664_s30  ;;  %p670_p5 = scmp.lt.s32.totalorder %s664_s30, %s664_s30 }
   0xc   :  { %p671_p6 = por %p670_p5, %p669_p4 }
   0xe   :  { %p672_p7 = pnand %p671_p6, %p665_p3 }
  0x10   :  { %675 = shalt.err (!%p672_p7)
}
  0x11   :  { %s749_s7 = smov 64   ;;  %s750_s8 = smov 4  }
  0x12   :  { %38 = dma.hbm_to_vmem [thread:$0]  %s887_s1, 128, %s33_s22, [#allocation6], %s749_s7, %s749_s7, %s750_s8  }
  0x13   :  { %s751_s11 = smov [#allocation2]   ;;  %s676_s15 = scalar_lea.hbm %s886_s0, 256 }
  0x14   :  { %s20_s12 = sshll.u32 %s751_s11, 4  ;;  %p677_p8 = scmp.ne.s32.totalorder %s886_s0, %s676_s15  ;;  %s21_s12 = int_to_ptr.vmem [resolvable:$true] %s20_s12 }
  0x15   :  { %p680_p9 = scmp.lt.u32.totalorder %s676_s15, %s886_s0 }
  0x17   :  { %p682_p10 = pnand %p680_p9, %p677_p8 }
  0x19   :  { %685 = shalt.err (!%p682_p10)
}
  0x1a   :  { %s686_s20 = scalar_lea.vmem %s21_s12, 256  ;;  %p691_p12 = scmp.lt.s32.totalorder %s21_s12, %s21_s12 }
  0x1b   :  { %p687_p11 = scmp.ne.s32.totalorder %s21_s12, %s686_s20  ;;  %p692_p13 = scmp.lt.s32.totalorder %s686_s20, %s686_s20 }
  0x1d   :  { %p693_p0 = por %p692_p13, %p691_p12 }
  0x1f   :  { %p694_p1 = pnand %p693_p0, %p687_p11 }
  0x21   :  { %697 = shalt.err (!%p694_p1)
}
  0x22   :  { %s752_s1 = smov 128   ;;  %s753_s21 = smov 8  }
  0x23   :  { %26 = dma.hbm_to_vmem [thread:$0]  %s886_s0, 256, %s21_s12, [#allocation3], %s752_s1, %s752_s1, %s753_s21  }
  0x24   :  { %s754_s24 = smov [#allocation7]   ;;  %s698_s28 = scalar_lea.hbm %s888_s2, 512 }
  0x25   :  { %s44_s25 = sshll.u32 %s754_s24, 4  ;;  %p699_p2 = scmp.ne.s32.totalorder %s888_s2, %s698_s28  ;;  %s45_s25 = int_to_ptr.vmem [resolvable:$true] %s44_s25 }
  0x26   :  { %p702_p3 = scmp.lt.u32.totalorder %s698_s28, %s888_s2 }
  0x28   :  { %p704_p4 = pnand %p702_p3, %p699_p2 }
  0x2a   :  { %707 = shalt.err (!%p704_p4)
}
  0x2b   :  { %s708_s9 = scalar_lea.vmem %s45_s25, 512  ;;  %p713_p6 = scmp.lt.s32.totalorder %s45_s25, %s45_s25 }
  0x2c   :  { %p709_p5 = scmp.ne.s32.totalorder %s45_s25, %s708_s9  ;;  %p714_p7 = scmp.lt.s32.totalorder %s708_s9, %s708_s9 }
  0x2e   :  { %p715_p8 = por %p714_p7, %p713_p6 }
  0x30   :  { %p716_p9 = pnand %p715_p8, %p709_p5 }
  0x32   :  { %719 = shalt.err (!%p716_p9)
}
  0x33   :  { %50 = dma.hbm_to_vmem [thread:$0]  %s888_s2, 512, %s45_s25, [#allocation6], %s752_s1, %s752_s1, %s753_s21  }
  0x34   :  { %742 = dma.done.wait [#allocation3], 256  }
  0x35   :  { %743 = vsyncadd [#allocation3], 4294967040 }
  0x36   :  { %744 = dma.done.wait [#allocation6], 640  }
  0x37   :  { %745 = vsyncadd [#allocation6], 4294966656  ;;  %v755_v0 = vmov 0.0   ;;  %vm79_vm0 = vcmask 261120   ;;  %v68_v1 = vld [vmem:[#allocation7] sm:$0xff]  ;;  %v69_v2 = vld [vmem:[#allocation7 + $0x8] sm:$0xff] }
  0x38   :  { %604 = vmatprep.subr.mxu1 %v755_v0  ;;  %v70_v3 = vld [vmem:[#allocation7 + $0x10] sm:$0xff]  ;;  %v624_v4 = vpack.c.bf16 %v69_v2, %v68_v1  ;;  %v71_v5 = vld [vmem:[#allocation7 + $0x18] sm:$0xff]  ;;  %v835_v6 = vld [vmem:[#allocation2] sm:$0xff]  ;;  %vm756_vm1 = vmmov 0   ;;  %vm313_vm2 = vcmask 31744   ;;  %vm393_vm3 = vcmask 1043456  }
  0x39   :  { %v628_v7 = vpack.c.bf16 %v71_v5, %v70_v3  ;;  %601 = vmatprep.mubr.msk.f32.mxu0 %vm79_vm0, %v835_v6  ;;  %v839_v8 = vld [vmem:[#allocation2 + $0x8] sm:$0xff]  ;;  %v66_v9 = vld [vmem:[#allocation5] sm:$0xf]  ;;  %606 = vmatprep.mubr.msk.f32.mxu1 %vm756_vm1, %v755_v0  ;;  %v567_v10 = vld [vmem:[%s889_s3] ss:$0 sm:$0xff]  ;;  %vm368_vm4 = vcmask 1041409  }
  0x3a   :  { %625 = vmatprep.subr.bf16.mxu0 %v624_v4  ;;  %605 = vmatpush3.xpose.msk.msra.mxu1 %vm79_vm0, %v66_v9  ;;  %v67_v14 = vld [vmem:[#allocation5 + $0x4] sm:$0xf]  ;;  %v574_v58 = vld [vmem:[%s890_s4] ss:$0 sm:$0xff]  ;;  %vm372_vm5 = vcmask 25600   ;;  %vm387_vm6 = vcmask 0  }
  0x3b   :  { %627 = vmatpush3.bf16.msra.mxu0 %v624_v4  ;;  %609 = vmatprep.subr.mxu1 %v755_v0  ;;  %s757_s16 = smov [#allocation8]  }
  0x3c   :  { %629 = vmatprep.subr.bf16.mxu0 %v628_v7  ;;  %s550_s17 = sshll.u32 %s757_s16, 4  ;;  %s551_s17 = int_to_ptr.vmem [resolvable:$true] %s550_s17 }
  0x3d   :  { %s720_s18 = scalar_lea.vmem %s551_s17, 256  ;;  %p725_p11 = scmp.lt.s32.totalorder %s551_s17, %s551_s17 }
  0x3e   :  { %p721_p10 = scmp.ne.s32.totalorder %s551_s17, %s720_s18  ;;  %p726_p12 = scmp.lt.s32.totalorder %s720_s18, %s720_s18 }
  0x3f   :  { %631 = vmatpush3.bf16.msra.mxu0 %v628_v7 }
  0x40   :  { %614 = vmatprep.subr.mxu0 %v755_v0  ;;  %p727_p13 = por %p726_p12, %p725_p11 }
  0x42   :  { %602 = vmatmul.mubr.msk.f32.vlgmr.msra.gmra.mrb[0].mxu0 %vm79_vm0, %v839_v8  ;;  %p728_p0 = pnand %p727_p13, %p721_p10 }
  0x43   :  { %616 = vmatprep.mubr.msk.f32.mxu0 %vm756_vm1, %v755_v0  ;;  %615 = vmatpush3.msk.msra.mxu0 %vm393_vm3, %v66_v9 }
 0x115   :  { %v603_v11 = vpop.f32.mrb[0].mxu0 }
 0x116   :  { %v152_v12 = vpop.f32.mrb[1].mxu0  ;;  %v158_v15 = vadd.f32 %v603_v11, %v567_v10 }
 0x117   :  { %v153_v13 = vadd.f32 %v567_v10, %v152_v12 }
 0x119   :  { %607 = vmatmul.mubr.msk.f32.vlgmr.msra.gmra.mrb[0].mxu1 %vm79_vm0, %v153_v13 }
 0x11a   :  { %610 = vmatpush3.xpose.msk.msra.mxu1 %vm79_vm0, %v67_v14  ;;  %611 = vmatprep.mubr.msk.f32.mxu1 %vm756_vm1, %v755_v0 }
 0x11b   :  { %619 = vmatprep.subr.mxu1 %v755_v0 }
 0x11d   :  { %612 = vmatmul.mubr.msk.f32.vlgmr.msra.gmra.mrb[2].mxu1 %vm79_vm0, %v158_v15 }
 0x11e   :  { %621 = vmatprep.mubr.msk.f32.mxu1 %vm756_vm1, %v755_v0  ;;  %620 = vmatpush3.msk.msra.mxu1 %vm393_vm3, %v67_v14  ;;  %v377_v0 = vlaneseq }
 0x120   :  { %v378_v1 = vshrl.u32 %v377_v0, 7 }
 0x122   :  { %v379_v2 = vsub.s32 0, %v378_v1  ;;  %v383_v3 = vsub.s32 1, %v378_v1 }
 0x1ec   :  { %v233_v16 = vpop.f32.mrb[0].mxu1 }
 0x1ed   :  { %v608_v17 = vpop.f32.mrb[1].mxu1  ;;  %v314_v18 = vsel %vm313_vm2, %v233_v16, -inf }
 0x1ee   :  { %315 = vmax.xlane.f32.xlu0 %v314_v18 }
 0x1f0   :  { %v309_v19 = vpop.f32.mrb[2].mxu1 }
 0x1f1   :  { %v613_v20 = vpop.f32.mrb[3].mxu1  ;;  %v317_v21 = vsel %vm313_vm2, %v309_v19, -inf }
 0x1f2   :  { %318 = vmax.xlane.f32.xlu0 %v317_v21 }
 0x27b   :  { %v316_v22 = vpop.xlane.xlu0 %315 }
 0x27c   :  { %v320_v23 = vsub.f32 %v233_v16, %v316_v22 }
 0x27e   :  { %v322_v24 = vmul.f32 1.442695, %v320_v23 }
 0x27f   :  { %v319_v25 = vpop.xlane.xlu0 %318 }
 0x280   :  { %642 = vpow2.f32 %v322_v24  ;;  %v321_v26 = vsub.f32 %v309_v19, %v319_v25 }
 0x282   :  { %v324_v27 = vmul.f32 1.442695, %v321_v26 }
 0x284   :  { %644 = vpow2.f32 %v324_v27 }
 0x28a   :  { %v643_v28 = vpop.eup %642 }
 0x28b   :  { %v326_v29 = vsel %vm313_vm2, %v643_v28, 0.0 }
 0x28c   :  { %327 = vadd.xlane.f32.xlu1 %v326_v29 }
 0x28e   :  { %v645_v30 = vpop.eup %644 }
 0x28f   :  { %v329_v31 = vsel %vm313_vm2, %v645_v30, 0.0 }
 0x290   :  { %330 = vadd.xlane.f32.xlu1 %v329_v31 }
 0x319   :  { %v328_v32 = vpop.xlane.xlu1 %327 }
 0x31a   :  { %646 = vrcp.f32 %v328_v32 }
 0x31d   :  { %v331_v33 = vpop.xlane.xlu1 %330 }
 0x31e   :  { %648 = vrcp.f32 %v331_v33 }
 0x324   :  { %v647_v34 = vpop.eup %646 }
 0x325   :  { %v334_v35 = vmul.f32 %v647_v34, %v643_v28 }
 0x327   :  { %v336_v36 = vsel %vm313_vm2, %v334_v35, 0.0  ;;  %617 = vmatmul.mubr.msk.f32.vlgmr.msra.gmra.mrb[2].mxu0 %vm313_vm2, %v334_v35 }
 0x328   :  { %v649_v37 = vpop.eup %648  ;;  %v337_v38 = vrot.slane %v336_v36, 4 }
 0x329   :  { %v335_v39 = vmul.f32 %v649_v37, %v645_v30 }
 0x32a   :  { %v338_v40 = vadd.f32 %v337_v38, %v336_v36 }
 0x32b   :  { %v343_v41 = vsel %vm313_vm2, %v335_v39, 0.0  ;;  %622 = vmatmul.mubr.msk.f32.vlgmr.msra.gmra.mrb[4].mxu1 %vm313_vm2, %v335_v39 }
 0x32c   :  { %v344_v42 = vrot.slane %v343_v41, 4  ;;  %v339_v43 = vrot.slane %v338_v40, 2 }
 0x32e   :  { %v345_v44 = vadd.f32 %v344_v42, %v343_v41  ;;  %v340_v45 = vadd.f32 %v339_v43, %v338_v40 }
 0x330   :  { %v346_v46 = vrot.slane %v345_v44, 2  ;;  %v341_v47 = vrot.slane %v340_v45, 1 }
 0x332   :  { %v342_v48 = vadd.f32 %v341_v47, %v340_v45  ;;  %v347_v49 = vadd.f32 %v346_v46, %v345_v44 }
 0x334   :  { %v348_v50 = vrot.slane %v347_v49, 1  ;;  %v351_v51 = vmul.f32 0.125, %v342_v48 }
 0x336   :  { %v349_v52 = vadd.f32 %v348_v50, %v347_v49  ;;  %v353_v53 = vmax.f32 %v351_v51, 1.1754944e-38 }
 0x338   :  { %v352_v54 = vmul.f32 0.125, %v349_v52  ;;  %650 = vlog2.f32 %v353_v53 }
 0x33a   :  { %v354_v55 = vmax.f32 %v352_v54, 1.1754944e-38 }
 0x33c   :  { %652 = vlog2.f32 %v354_v55 }
 0x342   :  { %v651_v56 = vpop.eup %650 }
 0x343   :  { %v357_v59 = vmul.f32 0.6931472, %v651_v56 }
 0x346   :  { %v653_v57 = vpop.eup %652 }
 0x347   :  { %v359_v60 = vmul.f32 0.6931472, %v653_v57 }
 0x349   :  { %v369_v61 = vsel %vm368_vm4, %v359_v60, %v357_v59 }
 0x34a   :  { %v371_v62 = vmul.f32 %v574_v58, %v369_v61 }
 0x34c   :  { %v373_v63 = vsel %vm372_vm5, %v371_v62, 0.0 }
 0x34d   :  { %374 = vadd.xlane.f32.xlu0 %v373_v63 }
 0x3da   :  { %v375_v4 = vpop.xlane.xlu0 %374 }
 0x3db   :  { %v380_v5 = vrot.slane %v375_v4, %v379_v2  ;;  %v384_v7 = vrot.slane %v375_v4, %v383_v3 }
 0x3dd   :  { %388 = vst.msk [vmem:[%s892_s6] sm:$0x1] %vm387_vm6, %v380_v5  ;;  %389 = vst.msk [vmem:[%s892_s6 + $0x1] sm:$0x1] %vm387_vm6, %v384_v7 }
 0x3fa   :  { %v462_v9 = vpop.f32.mrb[2].mxu0 }
 0x3fb   :  { %v541_v10 = vadd.f32 %v462_v9, %v835_v6  ;;  %v618_v11 = vpop.f32.mrb[3].mxu0 }
 0x3fd   :  { %543 = vst.msk [vmem:[#allocation8] sm:$0xff] %vm79_vm0, %v541_v10 }
 0x3fe   :  { %v537_v12 = vpop.f32.mrb[4].mxu1 }
 0x3ff   :  { %v542_v13 = vadd.f32 %v537_v12, %v839_v8  ;;  %v623_v14 = vpop.f32.mrb[5].mxu1 }
 0x401   :  { %544 = vst.msk [vmem:[#allocation8 + $0x8] sm:$0xff] %vm79_vm0, %v542_v13 }
 0x402   :  { %731 = shalt.err (!%p728_p0)
}
 0x403   :  { %s732_s20 = scalar_lea.hbm %s891_s5, 256 }
 0x404   :  { %p733_p1 = scmp.ne.s32.totalorder %s891_s5, %s732_s20  ;;  %p736_p2 = scmp.lt.u32.totalorder %s732_s20, %s891_s5 }
 0x406   :  { %p738_p3 = pnand %p736_p2, %p733_p1 }
 0x408   :  { %741 = shalt.err (!%p738_p3)
}
 0x409   :  { %556 = dma.vmem_to_hbm [thread:$0]  %s551_s17, 256, %s891_s5, [#allocation4], %s752_s1, %s752_s1, %s753_s21  }
 0x40a   :  { %746 = dma.done.wait [#allocation4], 256  }
 0x40b   :  { %747 = vsyncadd [#allocation4], 4294967040 }
 0x40c   :  { %564 = vsyncpa [#allocation3], 1 }
 0x40d   :  { %565 = vsyncpa [#allocation6], 1 }
 0x40e   :  { %566 = vsyncpa [#allocation4], 1 }

</bundles_post_ra>
